<compile_context>
chip_gen: v7x
topology: tpu7x:2x2x1
jax: 0.10.0
libtpu: 0.0.40
codegen_flags: <defaults>
</compile_context>

<pallas_src>
import functools

import jax
import jax.numpy as jnp
import numpy as np
from jax.experimental import pallas as pl
from jax.experimental.pallas import tpu as pltpu


# ---------------------------------------------------------------------------
# shared in-kernel helper: 5x5 zero-padded conv of the fsum channel plus the
# precomputed affine contribution of the two relative-coordinate channels,
# followed by the sigmoid.  `fsum` is a (1, HWp) f32 value.
# ---------------------------------------------------------------------------
def _compute_mask(fsum, x_ind, y_ind, aff_ref, xmask_ref, w0_ref, pad_ref,
                  *, W, HWp, front):
    # Zero only the halo lanes; the interior is fully overwritten by the fsum
    # store below.  Doing this every call (instead of only at program_id==0)
    # keeps the kernel correct if the batch axis is ever partitioned across
    # TensorCores, and the halo (~front + 2W+2 lanes) is tiny compared with the
    # full-buffer zero it replaces.
    pad_ref[:, pl.ds(0, front)] = jnp.zeros((1, front), jnp.float32)
    pad_ref[:, pl.ds(front + HWp, 2 * W + 2)] = jnp.zeros((1, 2 * W + 2),
                                                          jnp.float32)
    pad_ref[:, pl.ds(front, HWp)] = fsum          # 128-aligned, lane-dense store

    # relative-coordinate channels: affine in (x_ind, y_ind)
    aff = aff_ref[...]                                            # (3, HWp) f32
    acc = x_ind * aff[0:1, :] + y_ind * aff[1:2, :] + aff[2:3, :]

    # fsum channel: 5 row-base loads + 5 XLU rolls instead of 25 unaligned
    # loads; xmask zeroes exactly the lanes the circular roll wraps.
    bases = [pad_ref[:, pl.ds(front + (di - 2) * W, HWp)] for di in range(5)]
    xmask = xmask_ref[...]                                        # (5, HWp)
    for dj in range(5):
        col = w0_ref[dj] * bases[0]
        for di in range(1, 5):
            col = col + w0_ref[di * 5 + dj] * bases[di]
        shift = (2 - dj) % HWp
        if shift:
            col = pltpu.roll(col, shift=shift, axis=1)            # XLU slot
        acc = acc + col * xmask[dj:dj + 1, :]

    return jax.nn.sigmoid(acc)                                    # (1, HWp), EUP


# ---------------------------------------------------------------------------
# untiled kernel: one instance (1, C, HWp) per grid step
# ---------------------------------------------------------------------------
def _spatial_atten_kernel(inds_ref, gfeat_ref, p_ref, aff_ref, xmask_ref,
                          w0_ref, out_ref, pad_ref, *, W, HWp, front):
    b = pl.program_id(0)

    # channel-weighted sum of the features on the MXU (f32 accumulation)
    p_row = p_ref[pl.ds(b, 1), :].astype(gfeat_ref.dtype)          # (1, C)
    fsum = jnp.dot(p_row, gfeat_ref[0], preferred_element_type=jnp.float32)

    x_ind = inds_ref[b, 1].astype(jnp.float32)                     # torch.flip([1])
    y_ind = inds_ref[b, 0].astype(jnp.float32)
    mask = _compute_mask(fsum, x_ind, y_ind, aff_ref, xmask_ref, w0_ref,
                         pad_ref, W=W, HWp=HWp, front=front)

    # gate: re-read the features (do NOT keep the pre-dot load live across the
    # conv) -> Mosaic can stream vld -> vmul -> vst; single lane-dense store.
    out_ref[0] = (gfeat_ref[0] * mask).astype(out_ref.dtype)


# ---------------------------------------------------------------------------
# channel-tiled two-phase kernel (large C*HW, v7x 64 MiB VMEM):
#   phase 0: accumulate fsum over (1, Ct, HWp) tiles
#   phase 1: compute mask once (c == 0), gate every tile
# ---------------------------------------------------------------------------
def _spatial_atten_kernel_ct(inds_ref, gfeat_ref, p_ref, aff_ref, xmask_ref,
                             w0_ref, out_ref, fsum_ref, mask_ref, pad_ref,
                             *, W, HWp, front, ct):
    b = pl.program_id(0)
    ph = pl.program_id(1)
    c = pl.program_id(2)

    @pl.when(ph == 0)
    def _accumulate():
        @pl.when(c == 0)
        def _():
            fsum_ref[...] = jnp.zeros_like(fsum_ref)
        c0 = pl.multiple_of(c * ct, ct)
        p_row = p_ref[pl.ds(b, 1), pl.ds(c0, ct)].astype(gfeat_ref.dtype)
        fsum_ref[...] += jnp.dot(p_row, gfeat_ref[0],
                                 preferred_element_type=jnp.float32)

    @pl.when(ph == 1)
    def _gate():
        @pl.when(c == 0)
        def _():
            x_ind = inds_ref[b, 1].astype(jnp.float32)
            y_ind = inds_ref[b, 0].astype(jnp.float32)
            mask_ref[...] = _compute_mask(fsum_ref[...], x_ind, y_ind, aff_ref,
                                          xmask_ref, w0_ref, pad_ref,
                                          W=W, HWp=HWp, front=front)
        out_ref[0] = (gfeat_ref[0] * mask_ref[...]).astype(out_ref.dtype)


# ---------------------------------------------------------------------------
# wrapper
# ---------------------------------------------------------------------------
def _corr2_same(img, k):
    """5x5 'same' cross-correlation with zero padding 2 (exact f32, wrapper)."""
    H, W = img.shape
    p = jnp.pad(img, ((2, 2), (2, 2)))
    out = jnp.zeros((H, W), img.dtype)
    for di in range(5):
        for dj in range(5):
            out = out + k[di, dj] * p[di:di + H, dj:dj + W]
    return out


def spatial_atten(global_features, instance_params, instance_inds,
                  w_atn, b_atn, w_conv, b_conv, *, channel_tile=None):
    B, C, H, W = global_features.shape
    HW = H * W
    HWp = ((HW + 127) // 128) * 128          # lane-dense (unmasked vst) stores
    feat_dtype = global_features.dtype
    isz = jnp.dtype(feat_dtype).itemsize

    # Features stay in their native dtype (no wrapper f32 copy).  The reshape
    # to the lane-dense (B, C, HW) view is free; padding HW->HWp only happens
    # when HW is not already a multiple of 128.
    gf = global_features.reshape(B, C, HW)
    if HWp != HW:
        gf = jnp.pad(gf, ((0, 0), (0, 0), (0, HWp - HW)))

    w_conv = w_conv.astype(jnp.float32).reshape(3, 5, 5)

    # nn.Linear hoisted out of the per-instance grid (one (B,Cin)x(Cin,C) GEMM).
    p_all = (instance_params.astype(jnp.float32) @ w_atn.astype(jnp.float32)
             + b_atn.astype(jnp.float32).reshape(1, C))            # (B, C) f32

    # Instance-independent coefficient maps of the two relative-coordinate conv
    # channels:  conv(rel) = x_ind*Cx + y_ind*Cy + C0   (conv bias folded in).
    xs = jnp.arange(W, dtype=jnp.float32)
    ys = jnp.arange(H, dtype=jnp.float32)
    xg = jnp.broadcast_to(xs[None, :], (H, W))
    yg = jnp.broadcast_to(ys[:, None], (H, W))
    ones = jnp.ones((H, W), jnp.float32)
    cx = _corr2_same(ones, w_conv[1]) / 32.0
    cy = _corr2_same(ones, w_conv[2]) / 32.0
    c0 = (-(_corr2_same(xg, w_conv[1]) + _corr2_same(yg, w_conv[2])) / 32.0
          + b_conv.astype(jnp.float32).reshape(()))
    aff = jnp.stack([cx, cy, c0]).reshape(3, HW)

    # Horizontal validity masks for the in-kernel flat 5x5 conv (per dj).
    xpos = jnp.tile(jnp.arange(W, dtype=jnp.int32), H)             # x = f mod W
    xmask = jnp.stack(
        [((xpos + (dj - 2) >= 0) & (xpos + (dj - 2) <= W - 1)).astype(jnp.float32)
         for dj in range(5)])                                      # (5, HW)
    if HWp != HW:
        aff = jnp.pad(aff, ((0, 0), (0, HWp - HW)))
        xmask = jnp.pad(xmask, ((0, 0), (0, HWp - HW)))

    # Flat zero-padded conv buffer: [front halo | HWp interior | 2W+2 halo];
    # front is rounded up to 128 so the per-step fsum store is lane-aligned.
    front = ((2 * W + 2 + 127) // 128) * 128
    pad_len = front + HWp + 2 * W + 2

    # ---- generation-aware VMEM sizing / channel-tile choice ----------------
    try:
        info = pltpu.get_tpu_info()
        phys = int(getattr(info, "vmem_capacity_bytes", 0) or 0) or (64 << 20)
    except Exception:
        phys = 64 << 20                                            # v7x-safe default
    cap = max(min(phys - (16 << 20), 100 << 20), 32 << 20)         # ~48 MiB v7x,
                                                                   # ~100 MiB v5e/v6e
    small = 2 * (B * C * 4 + 8 * HWp * 4) + (2 * HWp + pad_len) * 4 + (1 << 20)

    ct = channel_tile
    if ct is None:
        if 4 * C * HWp * isz + small > cap:          # in+out, double-buffered
            divs = sorted((d for d in range(8, C, 8) if C % d == 0), reverse=True)
            for d in divs:
                if 4 * d * HWp * isz + small <= cap:
                    ct = d
                    break
            else:
                ct = divs[-1] if divs else None      # best effort / untilable
    elif ct >= C:
        ct = None
    elif C % ct != 0 or ct % 8 != 0:
        raise ValueError("channel_tile must divide C and be a multiple of 8")

    feat_block = 4 * (ct if ct else C) * HWp * isz
    need = int((feat_block + small) * 1.2)
    vmem_limit = max(32 << 20, min(need, cap))
    if need > cap:                                   # untilable fallback only
        vmem_limit = min(need, max(phys - (8 << 20), cap))

    inds = instance_inds.astype(jnp.int32)
    w0 = w_conv[0].reshape(-1)                       # (25,) f32 -> SMEM

    # TODO(synk): for tiny C*HW, fold several instances into one block
    # ((Bt, C, HWp) + inner fori_loop) to amortize the ~0.35us/step overhead.
    # TODO(synk): on v7x, verify "parallel" really shards B across both
    # TensorCores; otherwise switch that axis to pltpu.CORE_PARALLEL.
    if ct is None:
        kernel = functools.partial(_spatial_atten_kernel,
                                   W=W, HWp=HWp, front=front)
        grid_spec = pltpu.PrefetchScalarGridSpec(
            num_scalar_prefetch=1,                   # instance_inds -> SMEM
            grid=(B,),
            in_specs=[
                pl.BlockSpec((1, C, HWp), lambda b, i: (b, 0, 0)),     # features
                pl.BlockSpec((B, C), lambda b, i: (0, 0)),             # Linear out
                pl.BlockSpec((3, HWp), lambda b, i: (0, 0)),           # affine maps
                pl.BlockSpec((5, HWp), lambda b, i: (0, 0)),           # x masks
                pl.BlockSpec(memory_space=pltpu.MemorySpace.SMEM),     # conv w0
            ],
            out_specs=pl.BlockSpec((1, C, HWp), lambda b, i: (b, 0, 0)),
            scratch_shapes=[pltpu.VMEM((1, pad_len), jnp.float32)],
        )
        dims = ("parallel",)
    else:
        nct = C // ct
        kernel = functools.partial(_spatial_atten_kernel_ct,
                                   W=W, HWp=HWp, front=front, ct=ct)
        grid_spec = pltpu.PrefetchScalarGridSpec(
            num_scalar_prefetch=1,
            grid=(B, 2, nct),                        # phase 0: fsum, phase 1: gate
            in_specs=[
                pl.BlockSpec((1, ct, HWp), lambda b, ph, c, i: (b, c, 0)),
                pl.BlockSpec((B, C), lambda b, ph, c, i: (0, 0)),
                pl.BlockSpec((3, HWp), lambda b, ph, c, i: (0, 0)),
                pl.BlockSpec((5, HWp), lambda b, ph, c, i: (0, 0)),
                pl.BlockSpec(memory_space=pltpu.MemorySpace.SMEM),
            ],
            # Output block (b, 0) stays resident (unwritten) through phase 0 and
            # is first written at (ph=1, c=0); every block is written exactly
            # once and all revisits are consecutive.
            out_specs=pl.BlockSpec((1, ct, HWp),
                                   lambda b, ph, c, i: (b, c * ph, 0)),
            scratch_shapes=[pltpu.VMEM((1, HWp), jnp.float32),      # fsum acc
                            pltpu.VMEM((1, HWp), jnp.float32),      # mask
                            pltpu.VMEM((1, pad_len), jnp.float32)], # conv buffer
        )
        dims = ("parallel", "arbitrary", "arbitrary")

    out = pl.pallas_call(
        kernel,
        out_shape=jax.ShapeDtypeStruct((B, C, HWp), feat_dtype),
        grid_spec=grid_spec,
        compiler_params=pltpu.CompilerParams(
            dimension_semantics=dims,
            vmem_limit_bytes=int(vmem_limit)),
    )(inds, gf, p_all, aff, xmask, w0)

    if HWp != HW:
        out = out[:, :, :HW]
    return out.reshape(B, C, H, W)


# ---------------------------------------------------------------------------
# pure-JAX reproduction of the PyTorch forward (verification only)
# ---------------------------------------------------------------------------
def _reference(gf, ip, inds, w_atn, b_atn, w_conv, b_conv):
    B, C, H, W = gf.shape
    p = ip @ w_atn + b_atn                                          # (B, C)
    fsum = jnp.sum(gf * p[:, :, None, None], axis=1, keepdims=True)
    xs = jnp.arange(W, dtype=jnp.float32)
    ys = jnp.arange(H, dtype=jnp.float32)
    xg, yg = jnp.meshgrid(xs, ys)                                   # 'xy'
    locs_x = xg.reshape(-1)
    locs_y = yg.reshape(-1)
    inst_x = inds[:, 1].astype(jnp.float32)                         # flip([1])
    inst_y = inds[:, 0].astype(jnp.float32)
    rel0 = (inst_x[:, None] - locs_x[None, :]) / 32.0
    rel1 = (inst_y[:, None] - locs_y[None, :]) / 32.0
    rel = jnp.stack([rel0, rel1], axis=1).reshape(B, 2, H, W)
    inp = jnp.concatenate([fsum, rel], axis=1)                      # (B, 3, H, W)
    conv = jax.lax.conv_general_dilated(
        inp, w_conv.reshape(1, 3, 5, 5),
        window_strides=(1, 1), padding=((2, 2), (2, 2)),
        dimension_numbers=("NCHW", "OIHW", "NCHW")) + b_conv.reshape(1, 1, 1, 1)
    return gf * jax.nn.sigmoid(conv)


def _run_case(name, *, B, C, Cin, H, W, dtype, channel_tile=None, tol=1e-3,
              seed=0):
    keys = jax.random.split(jax.random.PRNGKey(seed), 6)
    gf32 = jax.random.normal(keys[0], (B, C, H, W), dtype=jnp.float32)
    ip = jax.random.normal(keys[1], (B, Cin), dtype=jnp.float32)
    w_atn = jax.random.normal(keys[2], (Cin, C), dtype=jnp.float32) * 0.1
    b_atn = jax.random.normal(keys[3], (C,), dtype=jnp.float32) * 0.1
    w_conv = jax.random.normal(keys[4], (3, 5, 5), dtype=jnp.float32) * 0.1
    b_conv = jax.random.normal(keys[5], (1,), dtype=jnp.float32) * 0.1
    inds = jnp.array([[3 % H, 5 % W], [H - 2, W - 3]], dtype=jnp.int32)  # (row,col)

    gf = gf32.astype(dtype)
    out = spatial_atten(gf, ip, inds, w_atn, b_atn, w_conv, b_conv,
                        channel_tile=channel_tile)
    out = jax.block_until_ready(out)

    ref = _reference(gf.astype(jnp.float32), ip, inds, w_atn, b_atn,
                     w_conv, b_conv)
    np.testing.assert_allclose(np.asarray(out.astype(jnp.float32)),
                               np.asarray(ref), rtol=tol, atol=tol,
                               err_msg=name)


if __name__ == "__main__":
    # n_inst == B is required by the torch.cat in the original forward.
    _run_case("f32-untiled", B=2, C=4, Cin=8, H=16, W=16, dtype=jnp.float32)
    _run_case("bf16-untiled", B=2, C=4, Cin=8, H=16, W=16, dtype=jnp.bfloat16,
              tol=3e-2)
    _run_case("f32-channel-tiled", B=2, C=16, Cin=8, H=16, W=16,
              dtype=jnp.float32, channel_tile=8)
    _run_case("f32-padded-HW", B=2, C=4, Cin=8, H=12, W=12, dtype=jnp.float32)
    print("KERNEL_OK")
</pallas_src>

<mosaic_0001>
module attributes {stable_mosaic.version = 11 : i64} {
  func.func @_spatial_atten_kernel(%arg0: i32, %arg1: memref<2x2xi32, #tpu.memory_space<smem>>, %arg2: memref<1x4x256xf32, #tpu.memory_space<vmem>>, %arg3: memref<2x4xf32, #tpu.memory_space<vmem>>, %arg4: memref<3x256xf32, #tpu.memory_space<vmem>>, %arg5: memref<5x256xf32, #tpu.memory_space<vmem>>, %arg6: memref<25xf32, #tpu.memory_space<smem>>, %arg7: memref<1x4x256xf32, #tpu.memory_space<vmem>>, %arg8: memref<1x418xf32, #tpu.memory_space<vmem>>) attributes {dimension_semantics = [#tpu.dimension_semantics<parallel>], iteration_bounds = array<i64: 2>, scalar_prefetch = 1 : i64, scratch_operands = 1 : i64, tpu.core_type = #tpu.core_type<tc>, window_params = [{transform_indices = @transform_0, window_bounds = array<i64: 1, 4, 256>}, {pipeline_mode = #tpu.pipeline_mode<synchronous>, transform_indices = @transform_1, window_bounds = array<i64: 2, 4>}, {pipeline_mode = #tpu.pipeline_mode<synchronous>, transform_indices = @transform_2, window_bounds = array<i64: 3, 256>}, {pipeline_mode = #tpu.pipeline_mode<synchronous>, transform_indices = @transform_3, window_bounds = array<i64: 5, 256>}, {transform_indices = @transform_4, window_bounds = array<i64: 25>}, {transform_indices = @transform_5, window_bounds = array<i64: 1, 4, 256>}]} {
    %0 = arith.index_cast %arg0 : i32 to index
    %c0 = arith.constant 0 : index
    %1 = vector.load %arg3[%0, %c0] : memref<2x4xf32, #tpu.memory_space<vmem>>, vector<1x4xf32>
    %c0_0 = arith.constant 0 : index
    %c0_1 = arith.constant 0 : index
    %c0_2 = arith.constant 0 : index
    %2 = vector.load %arg2[%c0_0, %c0_1, %c0_2] : memref<1x4x256xf32, #tpu.memory_space<vmem>>, vector<1x4x256xf32>
    %3 = vector.shape_cast %2 : vector<1x4x256xf32> to vector<4x256xf32>
    %cst = arith.constant dense<0.000000e+00> : vector<1x256xf32>
    %4 = tpu.matmul %1, %3, %cst {dimension_numbers = #tpu.dot_dimension_numbers<[1], [0], [0], [1], [0, 0, 1, 1], [], []>} : vector<1x4xf32>, vector<4x256xf32>, vector<1x256xf32> -> vector<1x256xf32>
    %5 = arith.index_cast %arg0 : i32 to index
    %c1 = arith.constant 1 : index
    %6 = memref.load %arg1[%5, %c1] : memref<2x2xi32, #tpu.memory_space<smem>>
    %7 = arith.sitofp %6 : i32 to f32
    %8 = arith.index_cast %arg0 : i32 to index
    %c0_3 = arith.constant 0 : index
    %9 = memref.load %arg1[%8, %c0_3] : memref<2x2xi32, #tpu.memory_space<smem>>
    %10 = arith.sitofp %9 : i32 to f32
    %cst_4 = arith.constant 0.000000e+00 : f32
    %11 = vector.broadcast %cst_4 : f32 to vector<1x128xf32>
    %c0_5 = arith.constant 0 : index
    %c0_6 = arith.constant 0 : index
    %12 = vector.load %arg8[%c0_5, %c0_6] : memref<1x418xf32, #tpu.memory_space<vmem>>, vector<1x128xf32>
    tpu.vector_store %arg8[%c0_5, %c0_6], %11 {strides = array<i32>} : memref<1x418xf32, #tpu.memory_space<vmem>>, vector<1x128xf32>,
    %cst_7 = arith.constant 0.000000e+00 : f32
    %13 = vector.broadcast %cst_7 : f32 to vector<1x34xf32>
    %c0_8 = arith.constant 0 : index
    %c384 = arith.constant 384 : index
    %14 = vector.load %arg8[%c0_8, %c384] : memref<1x418xf32, #tpu.memory_space<vmem>>, vector<1x34xf32>
    tpu.vector_store %arg8[%c0_8, %c384], %13 {strides = array<i32>} : memref<1x418xf32, #tpu.memory_space<vmem>>, vector<1x34xf32>,
    %c0_9 = arith.constant 0 : index
    %c128 = arith.constant 128 : index
    %15 = vector.load %arg8[%c0_9, %c128] : memref<1x418xf32, #tpu.memory_space<vmem>>, vector<1x256xf32>
    tpu.vector_store %arg8[%c0_9, %c128], %4 {strides = array<i32>} : memref<1x418xf32, #tpu.memory_space<vmem>>, vector<1x256xf32>,
    %c0_10 = arith.constant 0 : index
    %c0_11 = arith.constant 0 : index
    %16 = vector.load %arg4[%c0_10, %c0_11] : memref<3x256xf32, #tpu.memory_space<vmem>>, vector<3x256xf32>
    %17 = vector.extract_strided_slice %16 {offsets = [0, 0], sizes = [1, 256], strides = [1, 1]} : vector<3x256xf32> to vector<1x256xf32>
    %18 = vector.broadcast %7 : f32 to vector<1x256xf32>
    %19 = arith.mulf %18, %17 : vector<1x256xf32>
    %20 = vector.extract_strided_slice %16 {offsets = [1, 0], sizes = [1, 256], strides = [1, 1]} : vector<3x256xf32> to vector<1x256xf32>
    %21 = vector.broadcast %10 : f32 to vector<1x256xf32>
    %22 = arith.mulf %21, %20 : vector<1x256xf32>
    %23 = arith.addf %19, %22 : vector<1x256xf32>
    %24 = vector.extract_strided_slice %16 {offsets = [2, 0], sizes = [1, 256], strides = [1, 1]} : vector<3x256xf32> to vector<1x256xf32>
    %25 = arith.addf %23, %24 : vector<1x256xf32>
    %c0_12 = arith.constant 0 : index
    %c96 = arith.constant 96 : index
    %26 = vector.load %arg8[%c0_12, %c96] : memref<1x418xf32, #tpu.memory_space<vmem>>, vector<1x256xf32>
    %c0_13 = arith.constant 0 : index
    %c112 = arith.constant 112 : index
    %27 = vector.load %arg8[%c0_13, %c112] : memref<1x418xf32, #tpu.memory_space<vmem>>, vector<1x256xf32>
    %c0_14 = arith.constant 0 : index
    %c128_15 = arith.constant 128 : index
    %28 = vector.load %arg8[%c0_14, %c128_15] : memref<1x418xf32, #tpu.memory_space<vmem>>, vector<1x256xf32>
    %c0_16 = arith.constant 0 : index
    %c144 = arith.constant 144 : index
    %29 = vector.load %arg8[%c0_16, %c144] : memref<1x418xf32, #tpu.memory_space<vmem>>, vector<1x256xf32>
    %c0_17 = arith.constant 0 : index
    %c160 = arith.constant 160 : index
    %30 = vector.load %arg8[%c0_17, %c160] : memref<1x418xf32, #tpu.memory_space<vmem>>, vector<1x256xf32>
    %c0_18 = arith.constant 0 : index
    %c0_19 = arith.constant 0 : index
    %31 = vector.load %arg5[%c0_18, %c0_19] : memref<5x256xf32, #tpu.memory_space<vmem>>, vector<5x256xf32>
    %c0_20 = arith.constant 0 : index
    %32 = memref.load %arg6[%c0_20] : memref<25xf32, #tpu.memory_space<smem>>
    %33 = vector.broadcast %32 : f32 to vector<1x256xf32>
    %34 = arith.mulf %33, %26 : vector<1x256xf32>
    %c5 = arith.constant 5 : index
    %35 = memref.load %arg6[%c5] : memref<25xf32, #tpu.memory_space<smem>>
    %36 = vector.broadcast %35 : f32 to vector<1x256xf32>
    %37 = arith.mulf %36, %27 : vector<1x256xf32>
    %38 = arith.addf %34, %37 : vector<1x256xf32>
    %c10 = arith.constant 10 : index
    %39 = memref.load %arg6[%c10] : memref<25xf32, #tpu.memory_space<smem>>
    %40 = vector.broadcast %39 : f32 to vector<1x256xf32>
    %41 = arith.mulf %40, %28 : vector<1x256xf32>
    %42 = arith.addf %38, %41 : vector<1x256xf32>
    %c15 = arith.constant 15 : index
    %43 = memref.load %arg6[%c15] : memref<25xf32, #tpu.memory_space<smem>>
    %44 = vector.broadcast %43 : f32 to vector<1x256xf32>
    %45 = arith.mulf %44, %29 : vector<1x256xf32>
    %46 = arith.addf %42, %45 : vector<1x256xf32>
    %c20 = arith.constant 20 : index
    %47 = memref.load %arg6[%c20] : memref<25xf32, #tpu.memory_space<smem>>
    %48 = vector.broadcast %47 : f32 to vector<1x256xf32>
    %49 = arith.mulf %48, %30 : vector<1x256xf32>
    %50 = arith.addf %46, %49 : vector<1x256xf32>
    %c2_i32 = arith.constant 2 : i32
    %51 = tpu.dynamic_rotate %50 by %c2_i32 dim 1 : vector<1x256xf32>, i32 -> vector<1x256xf32>
    %52 = vector.extract_strided_slice %31 {offsets = [0, 0], sizes = [1, 256], strides = [1, 1]} : vector<5x256xf32> to vector<1x256xf32>
    %53 = arith.mulf %51, %52 : vector<1x256xf32>
    %54 = arith.addf %25, %53 : vector<1x256xf32>
    %c1_21 = arith.constant 1 : index
    %55 = memref.load %arg6[%c1_21] : memref<25xf32, #tpu.memory_space<smem>>
    %56 = vector.broadcast %55 : f32 to vector<1x256xf32>
    %57 = arith.mulf %56, %26 : vector<1x256xf32>
    %c6 = arith.constant 6 : index
    %58 = memref.load %arg6[%c6] : memref<25xf32, #tpu.memory_space<smem>>
    %59 = vector.broadcast %58 : f32 to vector<1x256xf32>
    %60 = arith.mulf %59, %27 : vector<1x256xf32>
    %61 = arith.addf %57, %60 : vector<1x256xf32>
    %c11 = arith.constant 11 : index
    %62 = memref.load %arg6[%c11] : memref<25xf32, #tpu.memory_space<smem>>
    %63 = vector.broadcast %62 : f32 to vector<1x256xf32>
    %64 = arith.mulf %63, %28 : vector<1x256xf32>
    %65 = arith.addf %61, %64 : vector<1x256xf32>
    %c16 = arith.constant 16 : index
    %66 = memref.load %arg6[%c16] : memref<25xf32, #tpu.memory_space<smem>>
    %67 = vector.broadcast %66 : f32 to vector<1x256xf32>
    %68 = arith.mulf %67, %29 : vector<1x256xf32>
    %69 = arith.addf %65, %68 : vector<1x256xf32>
    %c21 = arith.constant 21 : index
    %70 = memref.load %arg6[%c21] : memref<25xf32, #tpu.memory_space<smem>>
    %71 = vector.broadcast %70 : f32 to vector<1x256xf32>
    %72 = arith.mulf %71, %30 : vector<1x256xf32>
    %73 = arith.addf %69, %72 : vector<1x256xf32>
    %c1_i32 = arith.constant 1 : i32
    %74 = tpu.dynamic_rotate %73 by %c1_i32 dim 1 : vector<1x256xf32>, i32 -> vector<1x256xf32>
    %75 = vector.extract_strided_slice %31 {offsets = [1, 0], sizes = [1, 256], strides = [1, 1]} : vector<5x256xf32> to vector<1x256xf32>
    %76 = arith.mulf %74, %75 : vector<1x256xf32>
    %77 = arith.addf %54, %76 : vector<1x256xf32>
    %c2 = arith.constant 2 : index
    %78 = memref.load %arg6[%c2] : memref<25xf32, #tpu.memory_space<smem>>
    %79 = vector.broadcast %78 : f32 to vector<1x256xf32>
    %80 = arith.mulf %79, %26 : vector<1x256xf32>
    %c7 = arith.constant 7 : index
    %81 = memref.load %arg6[%c7] : memref<25xf32, #tpu.memory_space<smem>>
    %82 = vector.broadcast %81 : f32 to vector<1x256xf32>
    %83 = arith.mulf %82, %27 : vector<1x256xf32>
    %84 = arith.addf %80, %83 : vector<1x256xf32>
    %c12 = arith.constant 12 : index
    %85 = memref.load %arg6[%c12] : memref<25xf32, #tpu.memory_space<smem>>
    %86 = vector.broadcast %85 : f32 to vector<1x256xf32>
    %87 = arith.mulf %86, %28 : vector<1x256xf32>
    %88 = arith.addf %84, %87 : vector<1x256xf32>
    %c17 = arith.constant 17 : index
    %89 = memref.load %arg6[%c17] : memref<25xf32, #tpu.memory_space<smem>>
    %90 = vector.broadcast %89 : f32 to vector<1x256xf32>
    %91 = arith.mulf %90, %29 : vector<1x256xf32>
    %92 = arith.addf %88, %91 : vector<1x256xf32>
    %c22 = arith.constant 22 : index
    %93 = memref.load %arg6[%c22] : memref<25xf32, #tpu.memory_space<smem>>
    %94 = vector.broadcast %93 : f32 to vector<1x256xf32>
    %95 = arith.mulf %94, %30 : vector<1x256xf32>
    %96 = arith.addf %92, %95 : vector<1x256xf32>
    %97 = vector.extract_strided_slice %31 {offsets = [2, 0], sizes = [1, 256], strides = [1, 1]} : vector<5x256xf32> to vector<1x256xf32>
    %98 = arith.mulf %96, %97 : vector<1x256xf32>
    %99 = arith.addf %77, %98 : vector<1x256xf32>
    %c3 = arith.constant 3 : index
    %100 = memref.load %arg6[%c3] : memref<25xf32, #tpu.memory_space<smem>>
    %101 = vector.broadcast %100 : f32 to vector<1x256xf32>
    %102 = arith.mulf %101, %26 : vector<1x256xf32>
    %c8 = arith.constant 8 : index
    %103 = memref.load %arg6[%c8] : memref<25xf32, #tpu.memory_space<smem>>
    %104 = vector.broadcast %103 : f32 to vector<1x256xf32>
    %105 = arith.mulf %104, %27 : vector<1x256xf32>
    %106 = arith.addf %102, %105 : vector<1x256xf32>
    %c13 = arith.constant 13 : index
    %107 = memref.load %arg6[%c13] : memref<25xf32, #tpu.memory_space<smem>>
    %108 = vector.broadcast %107 : f32 to vector<1x256xf32>
    %109 = arith.mulf %108, %28 : vector<1x256xf32>
    %110 = arith.addf %106, %109 : vector<1x256xf32>
    %c18 = arith.constant 18 : index
    %111 = memref.load %arg6[%c18] : memref<25xf32, #tpu.memory_space<smem>>
    %112 = vector.broadcast %111 : f32 to vector<1x256xf32>
    %113 = arith.mulf %112, %29 : vector<1x256xf32>
    %114 = arith.addf %110, %113 : vector<1x256xf32>
    %c23 = arith.constant 23 : index
    %115 = memref.load %arg6[%c23] : memref<25xf32, #tpu.memory_space<smem>>
    %116 = vector.broadcast %115 : f32 to vector<1x256xf32>
    %117 = arith.mulf %116, %30 : vector<1x256xf32>
    %118 = arith.addf %114, %117 : vector<1x256xf32>
    %c255_i32 = arith.constant 255 : i32
    %119 = tpu.dynamic_rotate %118 by %c255_i32 dim 1 : vector<1x256xf32>, i32 -> vector<1x256xf32>
    %120 = vector.extract_strided_slice %31 {offsets = [3, 0], sizes = [1, 256], strides = [1, 1]} : vector<5x256xf32> to vector<1x256xf32>
    %121 = arith.mulf %119, %120 : vector<1x256xf32>
    %122 = arith.addf %99, %121 : vector<1x256xf32>
    %c4 = arith.constant 4 : index
    %123 = memref.load %arg6[%c4] : memref<25xf32, #tpu.memory_space<smem>>
    %124 = vector.broadcast %123 : f32 to vector<1x256xf32>
    %125 = arith.mulf %124, %26 : vector<1x256xf32>
    %c9 = arith.constant 9 : index
    %126 = memref.load %arg6[%c9] : memref<25xf32, #tpu.memory_space<smem>>
    %127 = vector.broadcast %126 : f32 to vector<1x256xf32>
    %128 = arith.mulf %127, %27 : vector<1x256xf32>
    %129 = arith.addf %125, %128 : vector<1x256xf32>
    %c14 = arith.constant 14 : index
    %130 = memref.load %arg6[%c14] : memref<25xf32, #tpu.memory_space<smem>>
    %131 = vector.broadcast %130 : f32 to vector<1x256xf32>
    %132 = arith.mulf %131, %28 : vector<1x256xf32>
    %133 = arith.addf %129, %132 : vector<1x256xf32>
    %c19 = arith.constant 19 : index
    %134 = memref.load %arg6[%c19] : memref<25xf32, #tpu.memory_space<smem>>
    %135 = vector.broadcast %134 : f32 to vector<1x256xf32>
    %136 = arith.mulf %135, %29 : vector<1x256xf32>
    %137 = arith.addf %133, %136 : vector<1x256xf32>
    %c24 = arith.constant 24 : index
    %138 = memref.load %arg6[%c24] : memref<25xf32, #tpu.memory_space<smem>>
    %139 = vector.broadcast %138 : f32 to vector<1x256xf32>
    %140 = arith.mulf %139, %30 : vector<1x256xf32>
    %141 = arith.addf %137, %140 : vector<1x256xf32>
    %c254_i32 = arith.constant 254 : i32
    %142 = tpu.dynamic_rotate %141 by %c254_i32 dim 1 : vector<1x256xf32>, i32 -> vector<1x256xf32>
    %143 = vector.extract_strided_slice %31 {offsets = [4, 0], sizes = [1, 256], strides = [1, 1]} : vector<5x256xf32> to vector<1x256xf32>
    %144 = arith.mulf %142, %143 : vector<1x256xf32>
    %145 = arith.addf %122, %144 : vector<1x256xf32>
    %146 = arith.negf %145 : vector<1x256xf32>
    %147 = math.exp %146 : vector<1x256xf32>
    %cst_22 = arith.constant 1.000000e+00 : f32
    %148 = vector.broadcast %cst_22 : f32 to vector<1x256xf32>
    %149 = arith.addf %148, %147 : vector<1x256xf32>
    %150 = arith.divf %148, %149 : vector<1x256xf32>
    %c0_23 = arith.constant 0 : index
    %c0_24 = arith.constant 0 : index
    %c0_25 = arith.constant 0 : index
    %151 = vector.load %arg2[%c0_23, %c0_24, %c0_25] : memref<1x4x256xf32, #tpu.memory_space<vmem>>, vector<1x4x256xf32>
    %152 = vector.shape_cast %151 : vector<1x4x256xf32> to vector<4x256xf32>
    %153 = vector.broadcast %150 : vector<1x256xf32> to vector<4x256xf32>
    %154 = arith.mulf %152, %153 : vector<4x256xf32>
    %c0_26 = arith.constant 0 : index
    %c0_27 = arith.constant 0 : index
    %c0_28 = arith.constant 0 : index
    %155 = vector.load %arg7[%c0_26, %c0_27, %c0_28] : memref<1x4x256xf32, #tpu.memory_space<vmem>>, vector<1x4x256xf32>
    %156 = vector.shape_cast %155 : vector<1x4x256xf32> to vector<4x256xf32>
    %157 = vector.shape_cast %154 : vector<4x256xf32> to vector<1x4x256xf32>
    tpu.vector_store %arg7[%c0_26, %c0_27, %c0_28], %157 {strides = array<i32>} : memref<1x4x256xf32, #tpu.memory_space<vmem>>, vector<1x4x256xf32>,
    return
  }
  func.func @transform_0(%arg0: i32, %arg1: memref<2x2xi32, #tpu.memory_space<smem>>) -> (i32, i32, i32) {
    %c0_i32 = arith.constant 0 : i32
    %c0_i32_0 = arith.constant 0 : i32
    %c0_i32_1 = arith.constant 0 : i32
    return %arg0, %c0_i32, %c0_i32_0 : i32, i32, i32
  }
  func.func @transform_1(%arg0: i32, %arg1: memref<2x2xi32, #tpu.memory_space<smem>>) -> (i32, i32) {
    %c0_i32 = arith.constant 0 : i32
    %c0_i32_0 = arith.constant 0 : i32
    %c0_i32_1 = arith.constant 0 : i32
    return %c0_i32, %c0_i32_0 : i32, i32
  }
  func.func @transform_2(%arg0: i32, %arg1: memref<2x2xi32, #tpu.memory_space<smem>>) -> (i32, i32) {
    %c0_i32 = arith.constant 0 : i32
    %c0_i32_0 = arith.constant 0 : i32
    %c0_i32_1 = arith.constant 0 : i32
    return %c0_i32, %c0_i32_0 : i32, i32
  }
  func.func @transform_3(%arg0: i32, %arg1: memref<2x2xi32, #tpu.memory_space<smem>>) -> (i32, i32) {
    %c0_i32 = arith.constant 0 : i32
    %c0_i32_0 = arith.constant 0 : i32
    %c0_i32_1 = arith.constant 0 : i32
    return %c0_i32, %c0_i32_0 : i32, i32
  }
  func.func @transform_4(%arg0: i32, %arg1: memref<2x2xi32, #tpu.memory_space<smem>>) -> i32 {
    %c0_i32 = arith.constant 0 : i32
    %c0_i32_0 = arith.constant 0 : i32
    return %c0_i32 : i32
  }
  func.func @transform_5(%arg0: i32, %arg1: memref<2x2xi32, #tpu.memory_space<smem>>) -> (i32, i32, i32) {
    %c0_i32 = arith.constant 0 : i32
    %c0_i32_0 = arith.constant 0 : i32
    %c0_i32_1 = arith.constant 0 : i32
    return %arg0, %c0_i32, %c0_i32_0 : i32, i32, i32
  }
}

</mosaic_0001>

<bundles_post_ra>
// kernel: tpu_custom_call.1
= control target key start
LH: loop header
LB: loop body
LE: loop exit
PB: predicated region body
PF: predicated region fallthrough
CT: control target
= control target key end

     0   :  { %s1747_s0 = inlined_call_operand.hbm [shape: s32[2,2], index: 0, kind: input, shape index: {}]   ;;  %s1748_s1 = inlined_call_operand.hbm [shape: f32[2,4,256], index: 1, kind: input, shape index: {}]   ;;  %s1749_s2 = inlined_call_operand.vmem [shape: f32[2,4], index: 2, kind: input, shape index: {}]   ;;  %s1750_s3 = inlined_call_operand.vmem [shape: f32[3,256], index: 3, kind: input, shape index: {}]   ;;  %s1751_s4 = inlined_call_operand.hbm [shape: f32[5,256], index: 4, kind: input, shape index: {}]   ;;  %s1752_s5 = inlined_call_operand.vmem [shape: f32[25], index: 5, kind: input, shape index: {}]   ;;  %s1753_s6 = inlined_call_operand.hbm [shape: f32[2,4,256], index: 6, kind: output, shape index: {}]  }
   0x1   :  { %s1122_s23 = scalar_lea.hbm %s1747_s0, 32 }
   0x2   :  { %p1123_p0 = scmp.ne.s32.totalorder %s1747_s0, %s1122_s23  ;;  %p1126_p1 = scmp.lt.u32.totalorder %s1122_s23, %s1747_s0 }
   0x4   :  { %p1128_p2 = pnand %p1126_p1, %p1123_p0 }
   0x6   :  { %1131 = shalt.err (!%p1128_p2)  }
   0x7   :  { %s1283_s28 = smov [#allocation4]  }
   0x8   :  { %12 = dma.hbm_to_smem %s1747_s0, 32, %s1283_s28, [#allocation3] }
   0x9   :  { %1249 = dma.done.wait [#allocation3], 32 }
   0xa   :  { %1250 = vsyncadd [#allocation3], 4294967264 }
   0xb   :  { %14 = sfence }
   0xc   :  { %15 = vsyncpa [#allocation6], 0 }
   0xd   :  { %17 = vsyncpa [#allocation6 + $0x1], 0 }
   0xe   :  { %18 = vsyncpa [#allocation10], 0 }
   0xf   :  { %19 = vsyncpa [#allocation8], 0 }
  0x10   :  { %20 = vsyncpa [#allocation7], 0 }
  0x11   :  { %22 = vsyncpa [#allocation7 + $0x1], 0  ;;  %s1348_s7 = smov 0   ;;  %s1350_s8 = smov 0  }
  0x12   :  { %s1352_s9 = smov 0   ;;  %s1354_s10 = smov 0  }
  0x13 LB: > { %s1369_s0 = sadd.s32 4294967295, %s1281_s10   ;;  %s984_s11 = sadd.s32 4294967294, %s1281_s10   ;;  %s1281_s10 = sphi %s1354_s10, %s1775_s10   ;;  %s1277_s9 = sphi %s1352_s9, %s1774_s9   ;;  %s1273_s8 = sphi %s1350_s8, %s1773_s8   ;;  %s1269_s7 = sphi %s1348_s7, %s1772_s7  }
  0x14   : > { %p48_p3 = scmp.ne.s32.totalorder %s1273_s8, %s1269_s7  ;;  %p1754_p4 = scmp.eq.s32.totalorder %s1369_s0, 0 }
  0x15   : > { %p162_p6 = scmp.eq.s32.totalorder %s984_s11, 1  ;;  %p985_p8 = scmp.ge.s32.totalorder %s1281_s10, 1 }
  0x16   : > { %p1378_p7 = por %p1754_p4, %p48_p3  ;;  %p169_p10 = scmp.lt.s32.totalorder %s1281_s10, 3 }
  0x17   : > { %p1383_p9 = por %p162_p6, %p48_p3  ;;  %s1284_s15 = smov [#allocation9]  }
  0x18   : > { %s1757_s12 = scalar_select %p1378_p7, 1, 0 }
  0x19   : > { %s1758_s13 = scalar_select %p1383_p9, 1, 0 }
  0x1a   : > { %p1388_p11 = pnand %p985_p8, %p169_p10  ;;  %s188_s16 = sshll.u32 %s1284_s15, 4  ;;  %s189_s16 = int_to_ptr.vmem [resolvable:$true] %s188_s16 }
  0x1b   : > { %s199_s19 = sshll.u32 %s1752_s5, 4  ;;  %s1407_s21 = sadd.s32 1, %s1281_s10   ;;  %s1398_s19 = int_to_ptr.vmem [resolvable:$true] %s199_s19 }
  0x1c   : > { %s1759_s14 = scalar_select %p1388_p11, 1, 0 }
  0x1d   : > { %p1047_p13 = pneg %p1388_p11  ;;  %s32_s22 = ssub.s32 %s1281_s10, %s1407_s21 }
  0x1e   : > { %s1132_s25 = scalar_lea.hbm %s1751_s4, 256 }
  0x1f   : > { %p1402_p0 = pnand %p1047_p13, %p1754_p4  ;;  %p1133_p1 = scmp.ne.s32.totalorder %s1751_s4, %s1132_s25 }
  0x20   : > { %p1139_p8 = scmp.lt.u32.totalorder %s1132_s25, %s1751_s4 }
  0x21   : > { %p1134_p2 = pneg %p1402_p0 }
  0x23   : > { %p1135_p3 = pnand %p1134_p2, %p1133_p1 }
  0x25   : > { %p1136_p6 = pneg %p1135_p3 }
  0x27   : > { %p1141_p10 = pnand %p1139_p8, %p1136_p6 }
  0x29   : > { %1144 = shalt.err (!%p1141_p10)
}
  0x2a   : > { %s1145_s30 = scalar_lea.vmem %s189_s16, 256  ;;  %p1153_p5 = scmp.lt.s32.totalorder %s189_s16, %s189_s16 }
  0x2b   : > { %p1146_p13 = scmp.ne.s32.totalorder %s189_s16, %s1145_s30  ;;  %p1154_p9 = scmp.lt.s32.totalorder %s1145_s30, %s1145_s30 }
  0x2d   : > { %p1148_p12 = pnand %p1146_p13, %p1134_p2  ;;  %p1155_p7 = por %p1154_p9, %p1153_p5 }
  0x2f   : > { %p1149_p4 = pneg %p1148_p12 }
  0x31   : > { %p1156_p11 = pnand %p1155_p7, %p1149_p4 }
  0x33   : > { %1159 = shalt.err (!%p1156_p11)
}
  0x34   : > { %1050 = dma.hbm_to_vmem [thread:$0]  (!%p1402_p0), %s1751_s4, 256, %s189_s16, [#allocation10]  }
  0x35   : > { %s1160_s17 = scalar_lea.vmem %s1398_s19, 16  ;;  %p1168_p5 = scmp.lt.s32.totalorder %s1398_s19, %s1398_s19 }
  0x36   : > { %p1161_p1 = scmp.ne.s32.totalorder %s1398_s19, %s1160_s17  ;;  %p1169_p4 = scmp.lt.s32.totalorder %s1160_s17, %s1160_s17 }
  0x38   : > { %p1163_p12 = pnand %p1161_p1, %p1134_p2  ;;  %p1170_p7 = por %p1169_p4, %p1168_p5 }
  0x3a   : > { %p1164_p3 = pneg %p1163_p12 }
  0x3c   : > { %p1171_p9 = pnand %p1170_p7, %p1164_p3 }
  0x3e   : > { %1174 = shalt.err (!%p1171_p9)
}
  0x3f   : > { %s1285_s18 = smov [#allocation11]   ;;  %p33_p11 = scmp.eq.s32.totalorder %s32_s22, 0 }
  0x40   : > { %1053 = dma.vmem_to_smem (!%p1402_p0), %s1398_s19, 16, %s1285_s18, [#allocation8]  }
  0x41   : > { %s35_s16 = sadd.s32 1, %s1277_s9  ;;  %p42_p2 = scmp.ne.s32.totalorder %s1277_s9, %s1273_s8 }
  0x42   : > { %p43_p6 = scmp.eq.s32.totalorder %s1281_s10, 0  ;;  %p1761_p10 = scmp.eq.s32.totalorder %s1369_s0, 1 }
  0x43   : > { %s1451_s23 = scalar_select %p33_p11, %s1277_s9, %s35_s16  }
  0x44   : > { %p44_p8 = por %p43_p6, %p42_p2  ;;  %p1455_p13 = por %p1761_p10, %p42_p2 }
  0x45   : > { %p1064_p1 = scmp.lt.s32.totalorder %s1281_s10, 2  ;;  %s210_s24 = sand.u32 1, %s1277_s9  }
  0x46   : > { %s989_s25 = sshll.u32 %s210_s24, 3  ;;  %s1033_s26 = sshll.u32 %s1281_s10, 7 }
  0x47   : > { %s1465_s19 = scalar_lea.hbm %s1748_s1, %s1033_s26  ;;  %s214_s22 = scalar_lea.vmem [#allocation5], %s989_s25 }
  0x48   : > { %s222_s29 = sshll.u32 %s214_s22, 4  ;;  %p1469_p0 = pnand %p1064_p1, %p44_p8  ;;  %s1467_s29 = int_to_ptr.vmem [resolvable:$true] %s222_s29 }
  0x49   : > { %s211_s11 = scalar_lea.sflag [#allocation6], %s210_s24  ;;  %s1175_s15 = scalar_lea.hbm %s1465_s19, 128 }
  0x4a   : > { %p1176_p12 = scmp.ne.s32.totalorder %s1465_s19, %s1175_s15  ;;  %p1177_p3 = pneg %p1469_p0 }
  0x4b   : > { %s1180_s16 = scalar_lea.hbm %s1748_s1, 256  ;;  %p1181_p7 = scmp.lt.u32.totalorder %s1465_s19, %s1748_s1 }
  0x4c   : > { %p1178_p5 = pnand %p1177_p3, %p1176_p12  ;;  %p1182_p9 = scmp.lt.u32.totalorder %s1180_s16, %s1175_s15 }
  0x4d   : > { %p1184_p2 = scmp.lt.u32.totalorder %s1175_s15, %s1465_s19 }
  0x4e   : > { %p1179_p4 = pneg %p1178_p5  ;;  %p1183_p11 = por %p1182_p9, %p1181_p7 }
  0x50   : > { %p1185_p6 = por %p1184_p2, %p1183_p11 }
  0x52   : > { %p1186_p8 = pnand %p1185_p6, %p1179_p4 }
  0x54   : > { %1189 = shalt.err (!%p1186_p8)
}
  0x55   : > { %s1190_s24 = scalar_lea.vmem %s1467_s29, 128  ;;  %s1286_s27 = smov [#allocation5]  }
  0x56   : > { %p1191_p10 = scmp.ne.s32.totalorder %s1467_s29, %s1190_s24  ;;  %s1195_s28 = sshll.u32 %s1286_s27, 4  ;;  %s1196_s28 = int_to_ptr.vmem [resolvable:$false] %s1195_s28 }
  0x57   : > { %s1197_s22 = scalar_lea.vmem %s1196_s28, 256  ;;  %p1198_p5 = scmp.lt.s32.totalorder %s1467_s29, %s1196_s28 }
  0x58   : > { %p1193_p1 = pnand %p1191_p10, %p1177_p3  ;;  %p1199_p7 = scmp.lt.s32.totalorder %s1197_s22, %s1190_s24 }
  0x5a   : > { %p1194_p12 = pneg %p1193_p1  ;;  %p1200_p9 = por %p1199_p7, %p1198_p5 }
  0x5c   : > { %p1201_p11 = pnand %p1200_p9, %p1194_p12 }
  0x5e   : > { %1204 = shalt.err (!%p1201_p11)
}
  0x5f   : > { %1057 = dma.hbm_to_vmem [thread:$0]  (!%p1469_p0), %s1465_s19, 128, %s1467_s29, %s211_s11  }
  0x60   : > { %p1764_p4 = scmp.ne.s32.totalorder %s1759_s14, 0 }
  0x61   : > { %s1501_s15 = sand.u32 (!%p1764_p4), 1, %s1273_s8   ;;  %p1765_p3 = scmp.ne.s32.totalorder (!%p1764_p4), %s1757_s12, 0 }
  0x62   : > { %231 = sbr.rel (%p1764_p4) target bundleno = 791 (0x317), region = 40  ;;  %s993_s17 = sshll.u32 (!%p1764_p4), %s1501_s15, 3 }
  0x63   : > { %s234_s18 = scalar_lea.sflag (!%p1764_p4), [#allocation6], %s1501_s15  ;;  %s237_s16 = scalar_lea.vmem (!%p1764_p4), [#allocation5], %s993_s17 }
  0x69   : > { %1252 = dma.done.wait (%p1765_p3), %s234_s18, 128  }
  0x6a   : > { %1254 = vsyncadd (%p1765_p3), %s234_s18, 4294967168  ;;  %p1766_p0 = scmp.eq.s32.totalorder %s1369_s0, 0 }
  0x6c   : > { %1256 = dma.done.wait (%p1766_p0), [#allocation10], 256   ;;  %p1767_p2 = pmov %p1766_p0 }
  0x6d   : > { %p1768_p6 = pmov %p1766_p0 }
  0x6e   : > { %1258 = vsyncadd (%p1767_p2), [#allocation10], 4294967040 }
  0x6f   : > { %1260 = dma.done.wait (%p1768_p6), [#allocation8], 16   ;;  %p1769_p8 = pmov %p1766_p0 }
  0x71   : > { %1262 = vsyncadd (%p1769_p8), [#allocation8], 4294967280 }
  0x72   : > { %250 = sfence }
  0x73   : > { %v1519_v0 = vld [vmem:[%s237_s16] sm:$0xff]  ;;  %vm282_vm0 = vcmask 1043456   ;;  %v364_v1 = vlaneseq  ;;  %s273_s19 = scalar_lea.vmem %s1749_s2, %s1369_s0  ;;  %v1287_v3 = vmov 0.0   ;;  %vm278_vm3 = vcmask 31744   ;;  %s1008_s29 = sld [smem:[#allocation11 + $0x6]] }
  0x74   : > { %v277_v2 = vcombine.high %v1519_v0, %v1519_v0  ;;  %351 = vmatprep.mubr.f32.mxu0 %v1287_v3  ;;  %v274_v4 = vld [vmem:[%s273_s19] sm:$0x1]  ;;  %v1288_v5 = vmov 1966171168   ;;  %s1003_s30 = sld [smem:[#allocation11 + $0x5]]  ;;  %s1005_s11 = sld [smem:[#allocation11 + $0xf]] }
  0x75   : > { %vm366_vm1 = vcmp.lt.s32.totalorder %v364_v1, 128  ;;  %vm369_vm2 = vcmp.lt.s32.totalorder %v364_v1, 34  ;;  %v376_v6 = vunpack.c.l.s4 %v1288_v5  ;;  %v1533_v7 = vshrl.u32 %v364_v1, 7  ;;  %s1004_s25 = sld [smem:[#allocation11 + $0xa]]  ;;  %s1006_s26 = sld [smem:[#allocation11 + $0x14]] }
  0x76   : > { %997 = vmatprep.subr.msk.mxu0 %vm282_vm0, %v277_v2  ;;  %368 = vst.msk [vmem:[#allocation2] sm:$0x1] %vm366_vm1, %v1287_v3  ;;  %vm390_vm4 = vcmp.lt.s32.totalorder %v364_v1, 256  ;;  %s1009_s24 = sld [smem:[#allocation11 + $0xb]]  ;;  %s1018_s27 = sld [smem:[#allocation11 + $0x8]]  ;;  %vm423_vm5 = vcmask 916480  }
  0x77   : > { %371 = vst.msk [vmem:[#allocation2 + $0x3] sm:$0x1] %vm369_vm2, %v1287_v3  ;;  %998 = vmatpush1.msk.msra.mxu0 %vm282_vm0, %v1519_v0  ;;  %v377_v8 = vunpack.c.0.s8 %v376_v6  ;;  %s1010_s28 = sld [smem:[#allocation11 + $0x10]]  ;;  %s1289_s22 = smov 112   ;;  %v1563_v36 = vld [vmem:[#allocation9] sm:$0x1f] }
  0x78   : > { %999 = vmatmul.mubr.msk.f32.vlgmr.msra.gmra.mrb[0].mxu0 %vm278_vm3, %v274_v4  ;;  %s1019_s18 = sld [smem:[#allocation11 + $0xd]]  ;;  %s1290_s12 = smov 80   ;;  %v1565_v37 = vld [vmem:[#allocation9 + $0x8] sm:$0x1f]  ;;  %vm434_vm6 = vcmask 785408   ;;  %vm445_vm7 = vcmask 654336  }
  0x79   : > { %v1536_v10 = vsub.s32 %v377_v8, %v1533_v7  ;;  %v504_v15 = vstv %s1008_s29  ;;  %s1011_s16 = sld [smem:[#allocation11 + $0x15]]  ;;  %s1291_s14 = smov 96   ;;  %v629_v42 = vcombine.low %v1563_v36, %v1565_v37  ;;  %vm456_vm8 = vcmask 523264  }
  0x7a   : > { %v417_v16 = vstv %s1003_s30  ;;  %v439_v21 = vstv %s1005_s11  ;;  %s1020_s19 = sld [smem:[#allocation11 + $0x12]]  ;;  %s1023_s29 = sld [smem:[#allocation11 + $0x9]]  ;;  %vm479_vm9 = vcmask 261120  }
  0x7b   : > { %v428_v23 = vstv %s1004_s25  ;;  %v450_v26 = vstv %s1006_s26  ;;  %s1292_s30 = smov 64   ;;  %s1021_s11 = sld [smem:[#allocation11 + $0x17]]  ;;  %v636_v47 = vrot.slane %v629_v42, %v1536_v10 }
  0x7c   : > { %v514_v27 = vstv %s1009_s24  ;;  %v680_v30 = vstv %s1018_s27  ;;  %s1024_s25 = sld [smem:[#allocation11 + $0xe]]  ;;  %s1026_s26 = sld [smem:[#allocation11 + $0x18]] }
  0x7d   : > { %v524_v31 = vstv %s1010_s28  ;;  %s1025_s24 = sld [smem:[#allocation11 + $0x13]]  ;;  %s1014_s27 = sld [smem:[#allocation11 + $0xc]]  ;;  %v643_v52 = vrot.slane %v636_v47, %v1536_v10 }
  0x7e   : > { %v690_v34 = vstv %s1019_s18  ;;  %s1016_s28 = sld [smem:[#allocation11 + $0x16]]  ;;  %s1013_s18 = sld [smem:[#allocation11 + $0x7]] }
  0x7f   : > { %v534_v35 = vstv %s1011_s16  ;;  %s1015_s16 = sld [smem:[#allocation11 + $0x11]]  ;;  %v644_v56 = vcombine.high %v643_v52, %v643_v52 }
  0x80   : > { %v700_v40 = vstv %s1020_s19  ;;  %v764_v41 = vstv %s1023_s29  ;;  %s413_s19 = sld [smem:[#allocation11]]  ;;  %s1007_s29 = sld [smem:[#allocation11 + $0x1]] }
  0x81   : > { %v710_v45 = vstv %s1021_s11  ;;  %s1296_s11 = smov 2  }
  0x82   : > { %v774_v46 = vstv %s1024_s25  ;;  %v794_v50 = vstv %s1026_s26  ;;  %s1297_s25 = smov 1   ;;  %s1298_s26 = smov 127  }
  0x83   : > { %v784_v51 = vstv %s1025_s24  ;;  %v600_v55 = vstv %s1014_s27  ;;  %s1299_s24 = smov 126   ;;  %s1674_s27 = sshll.u32 %s1369_s0, 7 }
  0x84   : > { %v620_v58 = vstv %s1016_s28  ;;  %v590_v59 = vstv %s1013_s18  ;;  %s362_s28 = sld [smem:[#allocation4 + %s1674_s27]]  ;;  %s359_s18 = sadd.s32 1, %s1674_s27 }
  0x85   : > { %v610_v62 = vstv %s1015_s16  ;;  %s360_s16 = sld [smem:[#allocation4 + %s359_s18]]  ;;  %s272_s0 = scalar_lea.vmem [#allocation12], %s993_s17 }
  0x86   : > { %v414_v4 = vstv %s413_s19  ;;  %s1300_s17 = smov [#allocation12]  }
  0x8a   : > { %s363_s19 = scvt.s32.f32 %s362_s28  ;;  %s1209_s28 = sshll.u32 %s1300_s17, 4  ;;  %s1210_s28 = int_to_ptr.vmem [resolvable:$false] %s1209_s28 }
  0x8b   : > { %s1211_s18 = scalar_lea.vmem %s1210_s28, 256 }
 0x14b   : > { %v353_v9 = vpop.f32.mrb[0].mxu0 }
 0x14c   : > { %v355_v11 = vpop.f32.mrb[1].mxu0 }
 0x14d   : > { %v374_v12 = vcombine.low %v353_v9, %v355_v11 }
 0x14f   : > { %v381_v13 = vrot.slane %v374_v12, %v1536_v10 }
 0x151   : > { %v388_v14 = vrot.slane %v381_v13, %v1536_v10 }
 0x153   : > { %392 = vst.msk [vmem:[#allocation2 + $0x1] sm:$0x3] %vm390_vm4, %v388_v14 }
 0x15a   : > { %v1541_v17 = vld [vmem:[#allocation2] sm:$0x7] }
 0x15b   : > { %v505_v18 = vmul.f32 %v504_v15, %v1541_v17  ;;  %v418_v19 = vmul.f32 %v417_v16, %v1541_v17  ;;  %v1545_v20 = vld [vmem:[#allocation2 + $0x1] sm:$0x7]  ;;  %v681_v32 = vmul.f32 %v680_v30, %v1541_v17  ;;  %v765_v44 = vmul.f32 %v764_v41, %v1541_v17 }
 0x15c   : > { %v1547_v22 = vld [vmem:[#allocation2 + $0x1] sm:$0x3]  ;;  %v440_v24 = vmul.f32 %v439_v21, %v1545_v20  ;;  %v451_v28 = vmul.f32 %v450_v26, %v1545_v20  ;;  %v525_v33 = vmul.f32 %v524_v31, %v1545_v20  ;;  %v535_v39 = vmul.f32 %v534_v35, %v1545_v20 }
 0x15d   : > { %507 = vrot.lane.b32.xlu1 %v505_v18, %s1289_s22  ;;  %420 = vrot.lane.b32.xlu0 %v418_v19, %s1289_s22  ;;  %v429_v25 = vmul.f32 %v428_v23, %v1547_v22  ;;  %v515_v29 = vmul.f32 %v514_v27, %v1547_v22  ;;  %v691_v38 = vmul.f32 %v690_v34, %v1547_v22  ;;  %v1606_v26 = vsub.s32 0, %v1533_v7 }
 0x15e   : > { %v701_v43 = vmul.f32 %v700_v40, %v1545_v20  ;;  %v711_v48 = vmul.f32 %v710_v45, %v1545_v20  ;;  %v775_v49 = vmul.f32 %v774_v46, %v1547_v22  ;;  %v795_v53 = vmul.f32 %v794_v50, %v1545_v20 }
 0x15f   : > { %v785_v54 = vmul.f32 %v784_v51, %v1545_v20  ;;  %v601_v57 = vmul.f32 %v600_v55, %v1547_v22  ;;  %v621_v60 = vmul.f32 %v620_v58, %v1545_v20  ;;  %v591_v61 = vmul.f32 %v590_v59, %v1541_v17 }
 0x160   : > { %v611_v63 = vmul.f32 %v610_v62, %v1545_v20  ;;  %v415_v8 = vmul.f32 %v414_v4, %v1541_v17  ;;  %v501_v20 = vstv %s1007_s29  ;;  %v1615_v40 = vsub.s32 2, %v1533_v7  ;;  %s361_s29 = scvt.s32.f32 %s360_s16 }
 0x161   : > { %442 = vrot.lane.b32.xlu1 %v440_v24, %s1290_s12  ;;  %431 = vrot.lane.b32.xlu0 %v429_v25, %s1291_s14  ;;  %v1603_v25 = vsub.s32 1, %v1533_v7 }
 0x165   : > { %453 = vrot.lane.b32.xlu1 %v451_v28, %s1292_s30  ;;  %517 = vrot.lane.b32.xlu0 %v515_v29, %s1291_s14  ;;  %v502_v29 = vmul.f32 %v501_v20, %v1541_v17 }
 0x169   : > { %683 = vrot.lane.b32.xlu1 %v681_v32, %s1289_s22  ;;  %527 = vrot.lane.b32.xlu0 %v525_v33, %s1290_s12 }
 0x16d   : > { %693 = vrot.lane.b32.xlu1 %v691_v38, %s1291_s14  ;;  %537 = vrot.lane.b32.xlu0 %v535_v39, %s1292_s30 }
 0x171   : > { %703 = vrot.lane.b32.xlu1 %v701_v43, %s1290_s12  ;;  %767 = vrot.lane.b32.xlu0 %v765_v44, %s1289_s22 }
 0x175   : > { %713 = vrot.lane.b32.xlu1 %v711_v48, %s1292_s30  ;;  %777 = vrot.lane.b32.xlu0 %v775_v49, %s1291_s14 }
 0x179   : > { %797 = vrot.lane.b32.xlu1 %v795_v53, %s1292_s30  ;;  %787 = vrot.lane.b32.xlu0 %v785_v54, %s1290_s12 }
 0x17d   : > { %603 = vrot.lane.b32.xlu1 %v601_v57, %s1291_s14  ;;  %645 = vrot.lane.b32.xlu0 %v644_v56, %s1291_s14  ;;  %s1293_s14 = smov 32  }
 0x181   : > { %623 = vrot.lane.b32.xlu1 %v621_v60, %s1292_s30  ;;  %593 = vrot.lane.b32.xlu0 %v591_v61, %s1289_s22  ;;  %s1600_s22 = sld [smem:[#allocation11 + $0x3]]  ;;  %s1012_s30 = sld [smem:[#allocation11 + $0x2]] }
 0x185   : > { %613 = vrot.lane.b32.xlu0 %v611_v63, %s1290_s12  ;;  %s1618_s12 = sld [smem:[#allocation11 + $0x4]] }
 0x187   : > { %v677_v46 = vstv %s1600_s22 }
 0x188   : > { %v678_v53 = vmul.f32 %v677_v46, %v1541_v17 }
 0x1cf   : > { %v508_v2 = vpop.permute.xlu1 %507  ;;  %v421_v3 = vpop.permute.xlu0 %420 }
 0x1d0   : > { %v422_v5 = vrot.slane %v421_v3, 1  ;;  %v509_v14 = vrot.slane %v508_v2, 1 }
 0x1d2   : > { %v424_v6 = vsel %vm423_vm5, %v421_v3, %v422_v5  ;;  %v510_v27 = vsel %vm423_vm5, %v508_v2, %v509_v14  ;;  %v761_v2 = vstv %s1618_s12 }
 0x1d3   : > { %v443_v9 = vpop.permute.xlu1 %442  ;;  %v432_v10 = vpop.permute.xlu0 %431  ;;  %v426_v13 = vadd.f32 %v424_v6, %v415_v8  ;;  %v512_v35 = vadd.f32 %v510_v27, %v502_v29 }
 0x1d4   : > { %v444_v11 = vrot.slane %v443_v9, 7  ;;  %v433_v12 = vrot.slane %v432_v10, 7 }
 0x1d6   : > { %v435_v15 = vsel %vm434_vm6, %v433_v12, %v432_v10  ;;  %v446_v21 = vsel %vm445_vm7, %v444_v11, %v443_v9  ;;  %v762_v11 = vmul.f32 %v761_v2, %v1541_v17 }
 0x1d7   : > { %v437_v16 = vadd.f32 %v435_v15, %v426_v13  ;;  %v454_v18 = vpop.permute.xlu1 %453  ;;  %v518_v19 = vpop.permute.xlu0 %517 }
 0x1d8   : > { %v455_v22 = vrot.slane %v454_v18, 7  ;;  %v519_v23 = vrot.slane %v518_v19, 7 }
 0x1d9   : > { %v448_v24 = vadd.f32 %v446_v21, %v437_v16 }
 0x1da   : > { %v457_v28 = vsel %vm456_vm8, %v455_v22, %v454_v18  ;;  %v520_v33 = vsel %vm434_vm6, %v519_v23, %v518_v19 }
 0x1db   : > { %v459_v30 = vadd.f32 %v457_v28, %v448_v24  ;;  %v684_v31 = vpop.permute.xlu1 %683  ;;  %v528_v32 = vpop.permute.xlu0 %527  ;;  %v522_v43 = vadd.f32 %v520_v33, %v512_v35 }
 0x1dc   : > { %v529_v34 = vrot.slane %v528_v32, 7  ;;  %v685_v41 = vrot.slane %v684_v31, 1 }
 0x1dd   : > { %v468_v38 = vrot.slane %v459_v30, %v1603_v25  ;;  %v464_v39 = vrot.slane %v459_v30, %v1606_v26  ;;  %v472_v50 = vrot.slane %v459_v30, %v1615_v40 }
 0x1de   : > { %v530_v42 = vsel %vm445_vm7, %v529_v34, %v528_v32  ;;  %v686_v51 = vsel %vm423_vm5, %v684_v31, %v685_v41  ;;  %v587_v34 = vstv %s1012_s30 }
 0x1df   : > { %v694_v44 = vpop.permute.xlu1 %693  ;;  %v538_v45 = vpop.permute.xlu0 %537  ;;  %475 = vrot.lane.b32.xlu0 %v468_v38, %s1293_s14  ;;  %473 = vrot.lane.b32.xlu1 %v464_v39, %s1293_s14  ;;  %v532_v49 = vadd.f32 %v530_v42, %v522_v43  ;;  %v688_v60 = vadd.f32 %v686_v51, %v678_v53  ;;  %v588_v43 = vmul.f32 %v587_v34, %v1541_v17 }
 0x1e0   : > { %v695_v47 = vrot.slane %v694_v44, 7  ;;  %v539_v48 = vrot.slane %v538_v45, 7 }
 0x1e2   : > { %v540_v52 = vsel %vm456_vm8, %v539_v48, %v538_v45  ;;  %v696_v57 = vsel %vm434_vm6, %v695_v47, %v694_v44  ;;  %v1294_v45 = vmov 858989090   ;;  %v1295_v47 = vmov 286326784  }
 0x1e3   : > { %v542_v54 = vadd.f32 %v540_v52, %v532_v49  ;;  %v704_v55 = vpop.permute.xlu1 %703  ;;  %v768_v56 = vpop.permute.xlu0 %767  ;;  %477 = vrot.lane.b32.xlu1 %v472_v50, %s1293_s14  ;;  %v698_v3 = vadd.f32 %v696_v57, %v688_v60  ;;  %v660_v46 = vunpack.c.l.s4 %v1294_v45  ;;  %v653_v48 = vunpack.c.l.s4 %v1295_v47 }
 0x1e4   : > { %v705_v58 = vrot.slane %v704_v55, 7  ;;  %v769_v59 = vrot.slane %v768_v56, 1  ;;  %v576_v47 = vrot.slane %v1565_v37, 1 }
 0x1e5   : > { %v547_v61 = vrot.slane %v542_v54, %v1606_v26  ;;  %v551_v62 = vrot.slane %v542_v54, %v1603_v25  ;;  %v555_v12 = vrot.slane %v542_v54, %v1615_v40  ;;  %v654_v57 = vunpack.c.0.s8 %v653_v48 }
 0x1e6   : > { %v706_v63 = vsel %vm445_vm7, %v705_v58, %v704_v55  ;;  %v770_v6 = vsel %vm423_vm5, %v768_v56, %v769_v59 }
 0x1e7   : > { %v714_v4 = vpop.permute.xlu1 %713  ;;  %v778_v5 = vpop.permute.xlu0 %777  ;;  %556 = vrot.lane.b32.xlu0 %v547_v61, %s1293_s14  ;;  %558 = vrot.lane.b32.xlu1 %v551_v62, %s1293_s14  ;;  %v708_v10 = vadd.f32 %v706_v63, %v698_v3  ;;  %v772_v15 = vadd.f32 %v770_v6, %v762_v11  ;;  %v657_v63 = vsub.s32 %v654_v57, %v1533_v7  ;;  %v750_v57 = vrot.slane %v1565_v37, 3 }
 0x1e8   : > { %v715_v8 = vrot.slane %v714_v4, 7  ;;  %v779_v9 = vrot.slane %v778_v5, 7 }
 0x1ea   : > { %v716_v13 = vsel %vm456_vm8, %v715_v8, %v714_v4  ;;  %v780_v14 = vsel %vm434_vm6, %v779_v9, %v778_v5 }
 0x1eb   : > { %v718_v16 = vadd.f32 %v716_v13, %v708_v10  ;;  %v798_v18 = vpop.permute.xlu1 %797  ;;  %v788_v19 = vpop.permute.xlu0 %787  ;;  %560 = vrot.lane.b32.xlu0 %v555_v12, %s1293_s14  ;;  %v782_v22 = vadd.f32 %v780_v14, %v772_v15 }
 0x1ec   : > { %v799_v20 = vrot.slane %v798_v18, 7  ;;  %v789_v21 = vrot.slane %v788_v19, 7 }
 0x1ed   : > { %v727_v23 = vrot.slane %v718_v16, %v1603_v25  ;;  %v723_v24 = vrot.slane %v718_v16, %v1606_v26  ;;  %v731_v33 = vrot.slane %v718_v16, %v1615_v40 }
 0x1ee   : > { %v790_v27 = vsel %vm445_vm7, %v789_v21, %v788_v19  ;;  %v800_v31 = vsel %vm456_vm8, %v799_v20, %v798_v18 }
 0x1ef   : > { %v792_v28 = vadd.f32 %v790_v27, %v782_v22  ;;  %v604_v29 = vpop.permute.xlu1 %603  ;;  %v646_v30 = vpop.permute.xlu0 %645  ;;  %734 = vrot.lane.b32.xlu0 %v727_v23, %s1293_s14  ;;  %732 = vrot.lane.b32.xlu1 %v723_v24, %s1293_s14 }
 0x1f0   : > { %v605_v39 = vrot.slane %v604_v29, 7  ;;  %v647_v54 = vrot.slane %v646_v30, 7 }
 0x1f1   : > { %v802_v32 = vadd.f32 %v800_v31, %v792_v28 }
 0x1f2   : > { %v606_v53 = vsel %vm434_vm6, %v605_v39, %v604_v29  ;;  %v648_v60 = vsel %vm434_vm6, %v647_v54, %v646_v30  ;;  %v393_v29 = vld [vmem:[%s1750_s3] sm:$0x77]  ;;  %v396_v30 = vstv %s363_s19 }
 0x1f3   : > { %v594_v35 = vpop.permute.xlu0 %593  ;;  %736 = vrot.lane.b32.xlu1 %v731_v33, %s1293_s14  ;;  %v807_v38 = vrot.slane %v802_v32, %v1606_v26  ;;  %v624_v42 = vpop.permute.xlu1 %623  ;;  %v811_v44 = vrot.slane %v802_v32, %v1603_v25  ;;  %v815_v52 = vrot.slane %v802_v32, %v1615_v40  ;;  %v661_v25 = vunpack.c.0.s8 %v660_v46 }
 0x1f4   : > { %v595_v41 = vrot.slane %v594_v35, 1  ;;  %v625_v17 = vrot.slane %v624_v42, 7  ;;  %v489_v33 = vand.u32 127, %v364_v1  ;;  %v397_v34 = vmul.f32 %v396_v30, %v393_v29 }
 0x1f5   : > { %816 = vrot.lane.b32.xlu0 %v807_v38, %s1293_s14  ;;  %v664_v40 = vsub.s32 %v661_v25, %v1533_v7  ;;  %v575_v46 = vrot.slane %v1563_v36, 1  ;;  %v1002_v1 = vrot.slane %v393_v29, 10  ;;  %v749_v25 = vrot.slane %v1563_v36, 3 }
 0x1f6   : > { %v596_v49 = vsel %vm423_vm5, %v594_v35, %v595_v41  ;;  %v626_v61 = vsel %vm456_vm8, %v625_v17, %v624_v42  ;;  %v394_v35 = vstv %s361_s29  ;;  %vm490_vm10 = vcmp.lt.s32.totalorder %v489_v33, 2 }
 0x1f7   : > { %v598_v50 = vadd.f32 %v596_v49, %v588_v43  ;;  %v614_v51 = vpop.permute.xlu0 %613  ;;  %818 = vrot.lane.b32.xlu1 %v811_v44, %s1293_s14  ;;  %v395_v41 = vmul.f32 %v394_v35, %v393_v29  ;;  %v1001_v42 = vrot.slane %v397_v34, 9  ;;  %vm570_vm11 = vcmp.lt.s32.totalorder %v489_v33, 1 }
 0x1f8   : > { %v615_v55 = vrot.slane %v614_v51, 7  ;;  %vm746_vm12 = vcmp.lt.s32.totalorder %v489_v33, 127  ;;  %vm830_vm13 = vcmp.lt.s32.totalorder %v489_v33, 126 }
 0x1f9   : > { %v608_v56 = vadd.f32 %v606_v53, %v598_v50  ;;  %820 = vrot.lane.b32.xlu0 %v815_v52, %s1293_s14 }
 0x1fa   : > { %v616_v58 = vsel %vm445_vm7, %v615_v55, %v614_v51  ;;  %v402_v51 = vadd.f32 %v1001_v42, %v395_v41 }
 0x1fb   : > { %v618_v59 = vadd.f32 %v616_v58, %v608_v56 }
 0x1fc   : > { %v407_v55 = vadd.f32 %v1002_v1, %v402_v51 }
 0x1fd   : > { %v628_v62 = vadd.f32 %v626_v61, %v618_v59 }
 0x1ff   : > { %v650_v2 = vmul.f32 %v648_v60, %v628_v62 }
 0x201   : > { %v665_v3 = vrot.slane %v650_v2, %v664_v40  ;;  %v658_v4 = vrot.slane %v650_v2, %v657_v63 }
 0x203   : > { %668 = vrot.lane.b32.xlu0 %v665_v3, %s1293_s14  ;;  %666 = vrot.lane.b32.xlu1 %v658_v4, %s1293_s14  ;;  %s891_s14 = sshll.u32 %s272_s0, 4  ;;  %s1705_s14 = int_to_ptr.vmem [resolvable:$true] %s891_s14 }
 0x204   : > { %p1212_p5 = scmp.lt.s32.totalorder %s1705_s14, %s1210_s28 }
 0x251   : > { %v476_v5 = vpop.permute.xlu0 %475  ;;  %v474_v6 = vpop.permute.xlu1 %473 }
 0x252   : > { %v480_v8 = vsel %vm479_vm9, %v474_v6, %v476_v5  ;;  %v833_v6 = vrot.slane %v1563_v36, 4 }
 0x253   : > { %484 = vrot.lane.b32.xlu1 %v480_v8, %s1296_s11  ;;  %v834_v8 = vrot.slane %v1565_v37, 4 }
 0x255   : > { %v478_v9 = vpop.permute.xlu1 %477 }
 0x256   : > { %v481_v10 = vsel %vm479_vm9, %v476_v5, %v478_v9 }
 0x257   : > { %486 = vrot.lane.b32.xlu0 %v481_v10, %s1296_s11 }
 0x259   : > { %v557_v11 = vpop.permute.xlu0 %556  ;;  %v559_v12 = vpop.permute.xlu1 %558 }
 0x25a   : > { %v562_v13 = vsel %vm479_vm9, %v557_v11, %v559_v12 }
 0x25b   : > { %566 = vrot.lane.b32.xlu1 %v562_v13, %s1297_s25 }
 0x25d   : > { %v561_v14 = vpop.permute.xlu0 %560 }
 0x25e   : > { %v563_v15 = vsel %vm479_vm9, %v559_v12, %v561_v14 }
 0x25f   : > { %568 = vrot.lane.b32.xlu0 %v563_v15, %s1297_s25  ;;  %s1703_s25 = scalar_lea.hbm %s1753_s6, %s1674_s27 }
 0x261   : > { %v735_v16 = vpop.permute.xlu0 %734  ;;  %v733_v18 = vpop.permute.xlu1 %732 }
 0x262   : > { %v738_v19 = vsel %vm479_vm9, %v733_v18, %v735_v16 }
 0x263   : > { %742 = vrot.lane.b32.xlu1 %v738_v19, %s1298_s26 }
 0x265   : > { %v737_v20 = vpop.permute.xlu1 %736 }
 0x266   : > { %v739_v21 = vsel %vm479_vm9, %v735_v16, %v737_v20 }
 0x267   : > { %v817_v22 = vpop.permute.xlu0 %816  ;;  %744 = vrot.lane.b32.xlu0 %v739_v21, %s1298_s26  ;;  %s877_s26 = scalar_lea.sflag [#allocation7], %s1501_s15 }
 0x269   : > { %v819_v23 = vpop.permute.xlu1 %818 }
 0x26a   : > { %v822_v24 = vsel %vm479_vm9, %v817_v22, %v819_v23 }
 0x26b   : > { %v821_v27 = vpop.permute.xlu0 %820  ;;  %826 = vrot.lane.b32.xlu1 %v822_v24, %s1299_s24  ;;  %v858_v24 = vsub.s32 4, %v1533_v7 }
 0x26c   : > { %v823_v28 = vsel %vm479_vm9, %v819_v23, %v821_v27 }
 0x26d   : > { %828 = vrot.lane.b32.xlu0 %v823_v28, %s1299_s24  ;;  %s1205_s24 = scalar_lea.vmem %s1705_s14, 128 }
 0x26e   : > { %p1206_p10 = scmp.ne.s32.totalorder %s1705_s14, %s1205_s24  ;;  %p1213_p7 = scmp.lt.s32.totalorder %s1211_s18, %s1205_s24 }
 0x270   : > { %p1207_p1 = pnand %p1206_p10, %p1455_p13  ;;  %p1214_p9 = por %p1213_p7, %p1212_p5 }
 0x272   : > { %p1208_p12 = pneg %p1207_p1 }
 0x274   : > { %p1215_p11 = pnand %p1214_p9, %p1208_p12 }
 0x275   : > { %v669_v31 = vpop.permute.xlu0 %668  ;;  %v667_v32 = vpop.permute.xlu1 %666 }
 0x276   : > { %v671_v58 = vrot.slane %v669_v31, 4  ;;  %v670_v59 = vrot.slane %v667_v32, 4 }
 0x278   : > { %v672_v5 = vsel %vm282_vm0, %v670_v59, %v671_v58 }
 0x279   : > { %v673_v13 = vsel %vm479_vm9, %v667_v32, %v672_v5 }
 0x2c5   : > { %v485_v38 = vpop.permute.xlu1 %484 }
 0x2c9   : > { %v487_v39 = vpop.permute.xlu0 %486 }
 0x2ca   : > { %v491_v43 = vsel %vm490_vm10, %v485_v38, %v487_v39  ;;  %v492_v44 = vsel %vm490_vm10, %v487_v39, %v485_v38 }
 0x2cb   : > { %v493_v52 = vmul.f32 %v492_v44, %v1563_v36  ;;  %v494_v53 = vmul.f32 %v491_v43, %v1565_v37 }
 0x2cd   : > { %v567_v45 = vpop.permute.xlu1 %566  ;;  %v497_v56 = vcombine.low %v493_v52, %v494_v53 }
 0x2cf   : > { %v499_v4 = vadd.f32 %v497_v56, %v407_v55 }
 0x2d1   : > { %v569_v48 = vpop.permute.xlu0 %568 }
 0x2d2   : > { %v571_v49 = vsel %vm570_vm11, %v567_v45, %v569_v48  ;;  %v572_v50 = vsel %vm570_vm11, %v569_v48, %v567_v45 }
 0x2d3   : > { %v579_v54 = vmul.f32 %v575_v46, %v572_v50  ;;  %v580_v17 = vmul.f32 %v576_v47, %v571_v49 }
 0x2d5   : > { %v583_v60 = vcombine.low %v579_v54, %v580_v17  ;;  %v743_v61 = vpop.permute.xlu1 %742 }
 0x2d7   : > { %v585_v9 = vadd.f32 %v583_v60, %v499_v4 }
 0x2d9   : > { %v745_v62 = vpop.permute.xlu0 %744  ;;  %v675_v19 = vadd.f32 %v673_v13, %v585_v9 }
 0x2da   : > { %v747_v40 = vsel %vm746_vm12, %v743_v61, %v745_v62  ;;  %v748_v63 = vsel %vm746_vm12, %v745_v62, %v743_v61 }
 0x2db   : > { %v753_v2 = vmul.f32 %v749_v25, %v747_v40  ;;  %v754_v3 = vmul.f32 %v750_v57, %v748_v63 }
 0x2dd   : > { %v757_v10 = vcombine.low %v753_v2, %v754_v3  ;;  %v827_v11 = vpop.permute.xlu1 %826 }
 0x2df   : > { %v829_v12 = vpop.permute.xlu0 %828  ;;  %v759_v21 = vadd.f32 %v757_v10, %v675_v19 }
 0x2e0   : > { %v831_v14 = vsel %vm830_vm13, %v827_v11, %v829_v12  ;;  %v832_v15 = vsel %vm830_vm13, %v829_v12, %v827_v11 }
 0x2e1   : > { %v837_v16 = vmul.f32 %v833_v6, %v831_v14  ;;  %v838_v18 = vmul.f32 %v834_v8, %v832_v15 }
 0x2e3   : > { %v841_v20 = vcombine.low %v837_v16, %v838_v18 }
 0x2e5   : > { %v843_v22 = vadd.f32 %v841_v20, %v759_v21 }
 0x2e7   : > { %v1027_v23 = vmul.f32 -1.442695, %v843_v22 }
 0x2e9   : > { %1118 = vpow2.f32 %v1027_v23 }
 0x2f3   : > { %v1119_v36 = vpop.eup %1118 }
 0x2f4   : > { %v847_v37 = vadd.f32 1.0, %v1119_v36 }
 0x2f6   : > { %1120 = vrcp.f32 %v847_v37 }
 0x300   : > { %v1121_v27 = vpop.eup %1120 }
 0x301   : > { %v855_v28 = vrot.slane %v1121_v27, %v1606_v26  ;;  %v859_v29 = vrot.slane %v1121_v27, %v858_v24 }
 0x303   : > { %v865_v30 = vrot.slane %v855_v28, %v1606_v26  ;;  %v869_v31 = vrot.slane %v859_v29, %v1606_v26 }
 0x305   : > { %v872_v32 = vcombine.low %v865_v30, %v869_v31 }
 0x307   : > { %v874_v33 = vmul.f32 %v872_v32, %v1519_v0 }
 0x309   : > { %875 = vst [vmem:[%s272_s0] sm:$0xff] %v874_v33 }
 0x30a   : > { %1218 = shalt.err (!%p1215_p11)
}
 0x30b   : > { %s1219_s15 = scalar_lea.hbm %s1703_s25, 128  ;;  %s1223_s19 = scalar_lea.hbm %s1753_s6, 256 }
 0x30c   : > { %p1220_p4 = scmp.ne.s32.totalorder %s1703_s25, %s1219_s15  ;;  %p1224_p2 = scmp.lt.u32.totalorder %s1703_s25, %s1753_s6 }
 0x30d   : > { %p1225_p6 = scmp.lt.u32.totalorder %s1223_s19, %s1219_s15  ;;  %p1227_p10 = scmp.lt.u32.totalorder %s1219_s15, %s1703_s25 }
 0x30e   : > { %p1221_p3 = pnand %p1220_p4, %p1455_p13 }
 0x30f   : > { %p1226_p8 = por %p1225_p6, %p1224_p2 }
 0x310   : > { %p1222_p0 = pneg %p1221_p3 }
 0x311   : > { %p1228_p1 = por %p1227_p10, %p1226_p8 }
 0x313   : > { %p1229_p12 = pnand %p1228_p1, %p1222_p0 }
 0x315   : > { %1232 = shalt.err (!%p1229_p12)
}
 0x316   : > { %1045 = dma.vmem_to_hbm [thread:$0]  (%p1455_p13), %s1705_s14, 128, %s1703_s25, %s877_s26  }
 0x317 PF: > { %s903_s12 = sand.u32 1, %s1269_s7   ;;  %p1770_p5 = scmp.ne.s32.totalorder %s1758_s13, 0 }
 0x318   : > { %p1771_p7 = scmp.ge.s32.totalorder %s1281_s10, 2  ;;  %s904_s0 = scalar_lea.sflag [#allocation7], %s903_s12 }
 0x31a   : > { %p1059_p9 = pnand %p1771_p7, %p1770_p5 }
 0x31c   : > { %1264 = dma.done.wait (!%p1059_p9), %s904_s0, 128  }
 0x31d   : > { %1266 = vsyncadd (!%p1059_p9), %s904_s0, 4294967168  ;;  %p25_p11 = scmp.ge.s32.totalorder %s1407_s21, 4   ;;  %s1772_s7 = smov %s1273_s8 }
 0x31e   : > { %s1773_s8 = smov %s1277_s9  ;;  %s1774_s9 = smov %s1451_s23 }
 0x31f   : > { %s1775_s10 = smov %s1407_s21  ;;  %27 = sbr.rel (!%p25_p11) target bundleno = 19 (0x13), region = 95 }
 0x326   :  { %909 = vsyncpa [#allocation6], 1 }
 0x327   :  { %911 = vsyncpa [#allocation6 + $0x1], 1 }
 0x328   :  { %912 = vsyncpa [#allocation10], 1 }
 0x329   :  { %913 = vsyncpa [#allocation7], 1 }
 0x32a   :  { %915 = vsyncpa [#allocation7 + $0x1], 1 }
 0x32b   :  { %916 = vsyncpa [#allocation8], 1 }
 0x32c   :  { %918 = vsyncpa [#allocation8 + $0x1], 1 }

</bundles_post_ra>
